<compile_context>
chip_gen: v5e
topology: v5e:2x2
jax: 0.10.0
libtpu: 0.0.40
codegen_flags: <defaults>
</compile_context>

<pallas_src>
from functools import partial

import jax
import jax.numpy as jnp
from jax import lax
from jax.experimental import pallas as pl
from jax.experimental.pallas import tpu as pltpu

EPS = 0.01
LANE = 128
SUBLANE = 8
TARGET_BLOCK_ROWS = 4096            # 4096 x 128 f32 = 2 MiB per block


# ---------------------------------------------------------------------------
# Kernel: per-element interval select + Horner evaluation.  All spline algebra
# lives in the wrapper; the kernel only touches SMEM scalars + the t block.
# ---------------------------------------------------------------------------
def _make_bspline_kernel(k: int, num_intervals: int, op_name: str):
    R = num_intervals
    single = op_name in ("SUM", "DIF", "X", "Y")

    def kernel(bp_ref, coef_ref, t_ref, out_ref):
        t = t_ref[...]
        u = t - bp_ref[0]                               # centered variable
        masks = [t < bp_ref[r] for r in range(1, R)]    # interval tests (shared)

        def eval_poly(base):
            acc = None
            for d in range(k - 1, -1, -1):
                c = coef_ref[base + (R - 1) * k + d]    # last interval's coef
                for r in range(R - 2, -1, -1):
                    c = jnp.where(masks[r], coef_ref[base + r * k + d], c)
                acc = c if acc is None else acc * u + c
            return acc

        if single:
            out = eval_poly(0)
        else:
            x = eval_poly(0)
            y = eval_poly(R * k)
            if op_name == "MUL":
                out = x * y
            elif op_name == "MAX":
                out = jnp.maximum(x, y)
            elif op_name == "MIN":
                out = jnp.minimum(x, y)
            else:
                raise ValueError(f"Unsupported operation in kernel: {op_name}")
        if out.shape != t.shape:                        # only possible when R == 1
            out = jnp.broadcast_to(out, t.shape)
        out_ref[...] = out

    return kernel


# ---------------------------------------------------------------------------
# Wrapper-side spline algebra (all scalar, fused by XLA, runs once per call).
# ---------------------------------------------------------------------------
def _safe_inv(den):
    # torch semantics: a zero denominator makes the whole term vanish.
    return jnp.where(den != 0.0, 1.0 / jnp.where(den != 0.0, den, 1.0), 0.0)


def _piecewise_basis_polys(knots, k, n, center):
    """Cox-de Boor recursion carried on per-interval polynomial coefficients.

    knots: python list of traced f32 scalars (clamped construction, len n+1+k).
    Returns (polys, R) where polys[i][r][d] is the coefficient of u**d
    (u = t - center) of B_{i,k} restricted to non-degenerate interval r.
    """
    first_j = k - 1
    R = n - k + 2
    zero = jnp.float32(0.0)
    one = jnp.float32(1.0)

    def mul_affine(p, alpha, beta):
        # (alpha + beta*u) * p(u), kept at degree <= k-1 (exact at every level).
        out = [zero] * k
        for d in range(k):
            out[d] = out[d] + alpha * p[d]
        for d in range(k - 1):
            out[d + 1] = out[d + 1] + beta * p[d]
        return out

    # order-1 (piecewise constant) bases: indicator of interval r
    b = [[([one] + [zero] * (k - 1)) if j == first_j + r else [zero] * k
          for r in range(R)]
         for j in range(n + k)]

    for kk in range(2, k + 1):
        nb = []
        for j in range(n + 1 + (k - kk)):
            inv1 = _safe_inv(knots[j + kk - 1] - knots[j])
            inv2 = _safe_inv(knots[j + kk] - knots[j + 1])
            a1, b1 = (center - knots[j]) * inv1, inv1          # (t - knots[j]) * inv1
            a2, b2 = (knots[j + kk] - center) * inv2, -inv2    # (knots[j+kk]-t) * inv2
            nb.append([
                [p1 + p2 for p1, p2 in zip(mul_affine(b[j][r], a1, b1),
                                           mul_affine(b[j + 1][r], a2, b2))]
                for r in range(R)
            ])
        b = nb
    return b, R


def _plan_layout(total):
    """Plan a (rows, 128) f32 slab with v5e/v6e/v7x-safe tiling."""
    rows = pl.cdiv(total, LANE)
    padded_total = rows * LANE                     # padding only if total % 128 != 0
    if rows <= SUBLANE:
        block_rows = rows                          # single full-extent block (tiny input)
    else:
        # >= 2 grid steps (v7x megacore + DMA/compute overlap), sublane-aligned,
        # blocks capped at 2 MiB f32.
        block_rows = max(SUBLANE, ((rows // 2) // SUBLANE) * SUBLANE)
        block_rows = min(block_rows, TARGET_BLOCK_ROWS)
    return rows, block_rows, padded_total


@partial(jax.jit, static_argnames=("k", "operation"))
def bspline_forward(t, control_points, k=3, operation="SUM"):
    """Pallas-backed equivalent of BSpline.forward with t_mode='normalize knots'."""
    if operation == "XY":
        # TODO(synk): Operation.XY (torch.column_stack of x and y) changes the
        # output shape; not implemented in this elementwise kernel.
        raise NotImplementedError("Operation.XY not supported")
    if operation not in ("SUM", "DIF", "MUL", "MAX", "MIN", "X", "Y"):
        raise ValueError(f"Unknown operation: {operation}")

    t = t.astype(jnp.float32)
    cp = control_points.astype(jnp.float32)
    n = cp.shape[0] - 1
    if n - k + 2 < 1:
        raise ValueError(f"Need at least k control points (got {n + 1}, k={k})")

    # --- knot setup: min AND max of t in a single fused reduction pass ---
    def _minmax(a, b):
        return (jnp.minimum(a[0], b[0]), jnp.maximum(a[1], b[1]))

    t_min, t_max = lax.reduce(
        (t, t),
        (jnp.array(jnp.inf, jnp.float32), jnp.array(-jnp.inf, jnp.float32)),
        _minmax, tuple(range(t.ndim)))
    m = t_min - EPS
    M = t_max + EPS

    free_knots = (n + 1 + k) - 2 * k
    lin = jnp.linspace(m, M, free_knots + 2).astype(jnp.float32)
    knots = ([m] * (k - 1)
             + [lin[i] for i in range(free_knots + 2)]
             + [M] * (k - 1))

    # --- hoist ALL spline algebra: per-interval polynomial coefficients ---
    center = knots[k - 1 + (n - k + 2) // 2]       # middle interior knot
    basis, R = _piecewise_basis_polys(knots, k, n, center)

    def combine(w):                                # C[r*k+d] = sum_i w[i]*basis[i][r][d]
        out = []
        for r in range(R):
            for d in range(k):
                s = w[0] * basis[0][r][d]
                for i in range(1, n + 1):
                    s = s + w[i] * basis[i][r][d]
                out.append(s)
        return out

    if operation == "SUM":
        coef_list = combine(cp[:, 0] + cp[:, 1])
    elif operation == "DIF":
        coef_list = combine(cp[:, 0] - cp[:, 1])
    elif operation == "X":
        coef_list = combine(cp[:, 0])
    elif operation == "Y":
        coef_list = combine(cp[:, 1])
    else:                                          # MUL / MAX / MIN need both columns
        coef_list = combine(cp[:, 0]) + combine(cp[:, 1])
    coeffs = jnp.stack(coef_list).astype(jnp.float32)

    # bp[0] = centering shift, bp[1..R-1] = interior interval breakpoints
    bp = jnp.stack([center] + [knots[k - 1 + r] for r in range(1, R)]).astype(jnp.float32)

    # --- lane-dense slab + generation-safe tiling ---
    orig_shape = t.shape
    total = t.size
    flat = t.reshape(-1)
    rows, block_rows, padded_total = _plan_layout(total)
    if padded_total != total:                      # only when total % 128 != 0
        flat = jnp.pad(flat, (0, padded_total - total))
    t2d = flat.reshape(rows, LANE)
    grid = (pl.cdiv(rows, block_rows),)

    out2d = pl.pallas_call(
        _make_bspline_kernel(k, R, operation),
        out_shape=jax.ShapeDtypeStruct((rows, LANE), jnp.float32),
        grid=grid,
        in_specs=[
            pl.BlockSpec(memory_space=pltpu.MemorySpace.SMEM),    # bp (center + breakpoints)
            pl.BlockSpec(memory_space=pltpu.MemorySpace.SMEM),    # polynomial coefficients
            pl.BlockSpec((block_rows, LANE), lambda i: (i, 0)),   # t block
        ],
        out_specs=pl.BlockSpec((block_rows, LANE), lambda i: (i, 0)),
        compiler_params=pltpu.CompilerParams(dimension_semantics=("parallel",)),
    )(bp, coeffs, t2d)

    out = out2d.reshape(-1)
    if padded_total != total:
        out = out[:total]
    return out.reshape(orig_shape)


# ---------------- pure-JAX reference (mirrors the torch recursion) ----------------
def _ref_bspline(t, control_points, k=3, operation="SUM"):
    t = t.astype(jnp.float32)
    cp = control_points.astype(jnp.float32)
    n = cp.shape[0] - 1
    m = jnp.min(t) - EPS
    M = jnp.max(t) + EPS
    knots = jnp.concatenate(
        [
            jnp.full((k - 1,), m, jnp.float32),
            jnp.linspace(m, M, (n + 1 + k) - 2 * k + 2).astype(jnp.float32),
            jnp.full((k - 1,), M, jnp.float32),
        ]
    )

    def basis(i, kk):
        if kk == 1:
            return jnp.where((knots[i] <= t) & (t < knots[i + 1]), 1.0, 0.0)
        den1 = knots[i + kk - 1] - knots[i]
        den2 = knots[i + kk] - knots[i + 1]
        r1 = jnp.where(den1 != 0.0, (t - knots[i]) / jnp.where(den1 != 0.0, den1, 1.0), 0.0)
        r2 = jnp.where(den2 != 0.0, (knots[i + kk] - t) / jnp.where(den2 != 0.0, den2, 1.0), 0.0)
        return r1 * basis(i, kk - 1) + r2 * basis(i + 1, kk - 1)

    x = jnp.zeros_like(t)
    y = jnp.zeros_like(t)
    for i in range(n + 1):
        b = basis(i, k)
        x = x + cp[i, 0] * b
        y = y + cp[i, 1] * b
    ops = {"SUM": x + y, "DIF": x - y, "MUL": x * y,
           "MAX": jnp.maximum(x, y), "MIN": jnp.minimum(x, y), "X": x, "Y": y}
    return ops[operation]


if __name__ == "__main__":
    key = jax.random.PRNGKey(0)
    k_cp, k_t = jax.random.split(key)

    # Deterministic parameter init (cp_mode='random', cp_count=4 -> (4, 2)).
    control_points = jax.random.uniform(k_cp, (4, 2), jnp.float32)

    # Example input t (NCHW, elementwise spline evaluation).
    x = jax.random.normal(k_t, (2, 4, 16, 16), jnp.float32)

    out = jax.block_until_ready(bspline_forward(x, control_points, k=3, operation="SUM"))
    ref = _ref_bspline(x, control_points, k=3, operation="SUM")
    assert out.shape == x.shape and out.dtype == jnp.float32
    assert jnp.allclose(out, ref, atol=1e-5, rtol=1e-5), "SUM mismatch vs reference"

    # Dual-accumulator path (both control-point columns needed).
    out_mul = jax.block_until_ready(bspline_forward(x, control_points, k=3, operation="MUL"))
    ref_mul = _ref_bspline(x, control_points, k=3, operation="MUL")
    assert jnp.allclose(out_mul, ref_mul, atol=1e-5, rtol=1e-5), "MUL mismatch vs reference"

    # Ragged size (exercises the pad-only-when-needed fallback path).
    x_small = jax.random.normal(jax.random.PRNGKey(1), (3, 5, 7), jnp.float32)
    out_small = jax.block_until_ready(bspline_forward(x_small, control_points, k=3, operation="SUM"))
    ref_small = _ref_bspline(x_small, control_points, k=3, operation="SUM")
    assert out_small.shape == x_small.shape
    assert jnp.allclose(out_small, ref_small, atol=1e-5, rtol=1e-5), "ragged mismatch vs reference"

    print("KERNEL_OK")
</pallas_src>

<mosaic_0001>
module attributes {stable_mosaic.version = 11 : i64} {
  func.func @kernel(%arg0: i32, %arg1: memref<2xf32, #tpu.memory_space<smem>>, %arg2: memref<6xf32, #tpu.memory_space<smem>>, %arg3: memref<8x128xf32, #tpu.memory_space<vmem>>, %arg4: memref<8x128xf32, #tpu.memory_space<vmem>>) attributes {dimension_semantics = [#tpu.dimension_semantics<parallel>], iteration_bounds = array<i64: 2>, scalar_prefetch = 0 : i64, scratch_operands = 0 : i64, tpu.core_type = #tpu.core_type<tc>, window_params = [{transform_indices = @transform_0, window_bounds = array<i64: 2>}, {transform_indices = @transform_1, window_bounds = array<i64: 6>}, {transform_indices = @transform_2, window_bounds = array<i64: 8, 128>}, {transform_indices = @transform_3, window_bounds = array<i64: 8, 128>}]} {
    %c0 = arith.constant 0 : index
    %c0_0 = arith.constant 0 : index
    %0 = vector.load %arg3[%c0, %c0_0] : memref<8x128xf32, #tpu.memory_space<vmem>>, vector<8x128xf32>
    %c0_1 = arith.constant 0 : index
    %1 = memref.load %arg1[%c0_1] : memref<2xf32, #tpu.memory_space<smem>>
    %2 = vector.broadcast %1 : f32 to vector<8x128xf32>
    %3 = arith.subf %0, %2 : vector<8x128xf32>
    %c1 = arith.constant 1 : index
    %4 = memref.load %arg1[%c1] : memref<2xf32, #tpu.memory_space<smem>>
    %5 = vector.broadcast %4 : f32 to vector<8x128xf32>
    %6 = arith.cmpf olt, %0, %5 : vector<8x128xf32>
    %c5 = arith.constant 5 : index
    %7 = memref.load %arg2[%c5] : memref<6xf32, #tpu.memory_space<smem>>
    %c2 = arith.constant 2 : index
    %8 = memref.load %arg2[%c2] : memref<6xf32, #tpu.memory_space<smem>>
    %9 = vector.broadcast %8 : f32 to vector<8x128xf32>
    %10 = vector.broadcast %7 : f32 to vector<8x128xf32>
    %11 = arith.select %6, %9, %10 : vector<8x128xi1>, vector<8x128xf32>
    %c4 = arith.constant 4 : index
    %12 = memref.load %arg2[%c4] : memref<6xf32, #tpu.memory_space<smem>>
    %c1_2 = arith.constant 1 : index
    %13 = memref.load %arg2[%c1_2] : memref<6xf32, #tpu.memory_space<smem>>
    %14 = vector.broadcast %13 : f32 to vector<8x128xf32>
    %15 = vector.broadcast %12 : f32 to vector<8x128xf32>
    %16 = arith.select %6, %14, %15 : vector<8x128xi1>, vector<8x128xf32>
    %17 = arith.mulf %11, %3 : vector<8x128xf32>
    %18 = arith.addf %17, %16 : vector<8x128xf32>
    %c3 = arith.constant 3 : index
    %19 = memref.load %arg2[%c3] : memref<6xf32, #tpu.memory_space<smem>>
    %c0_3 = arith.constant 0 : index
    %20 = memref.load %arg2[%c0_3] : memref<6xf32, #tpu.memory_space<smem>>
    %21 = vector.broadcast %20 : f32 to vector<8x128xf32>
    %22 = vector.broadcast %19 : f32 to vector<8x128xf32>
    %23 = arith.select %6, %21, %22 : vector<8x128xi1>, vector<8x128xf32>
    %24 = arith.mulf %18, %3 : vector<8x128xf32>
    %25 = arith.addf %24, %23 : vector<8x128xf32>
    %c0_4 = arith.constant 0 : index
    %c0_5 = arith.constant 0 : index
    %26 = vector.load %arg4[%c0_4, %c0_5] : memref<8x128xf32, #tpu.memory_space<vmem>>, vector<8x128xf32>
    tpu.vector_store %arg4[%c0_4, %c0_5], %25 {strides = array<i32>} : memref<8x128xf32, #tpu.memory_space<vmem>>, vector<8x128xf32>,
    return
  }
  func.func @transform_0(%arg0: i32) -> i32 {
    %c0_i32 = arith.constant 0 : i32
    %c0_i32_0 = arith.constant 0 : i32
    return %c0_i32 : i32
  }
  func.func @transform_1(%arg0: i32) -> i32 {
    %c0_i32 = arith.constant 0 : i32
    %c0_i32_0 = arith.constant 0 : i32
    return %c0_i32 : i32
  }
  func.func @transform_2(%arg0: i32) -> (i32, i32) {
    %c0_i32 = arith.constant 0 : i32
    %c0_i32_0 = arith.constant 0 : i32
    return %arg0, %c0_i32 : i32, i32
  }
  func.func @transform_3(%arg0: i32) -> (i32, i32) {
    %c0_i32 = arith.constant 0 : i32
    %c0_i32_0 = arith.constant 0 : i32
    return %arg0, %c0_i32 : i32, i32
  }
}

</mosaic_0001>

<bundles_post_ra>
// kernel: bspline_forward.1
= control target key start
LH: loop header
LB: loop body
LE: loop exit
PB: predicated region body
PF: predicated region fallthrough
CT: control target
= control target key end

     0   :  { %8 = vsyncpa [#allocation3], 0  ;;  %s439_s0 = inlined_call_operand.vmem [shape: f32[2], index: 0, kind: input, shape index: {}]   ;;  %s440_s1 = inlined_call_operand.vmem [shape: f32[6], index: 1, kind: input, shape index: {}]   ;;  %s441_s2 = inlined_call_operand.vmem [shape: f32[16,128], index: 2, kind: input, shape index: {}]   ;;  %s442_s3 = inlined_call_operand.vmem [shape: f32[16,128], index: 3, kind: output, shape index: {}]  }
   0x1   :  { %9 = vsyncpa [#allocation5], 0  ;;  %s411_s12 = smov 0  }
   0x2 LB: > { %s295_s13 = sadd.s32 4294967295, %s387_s12   ;;  %p297_p0 = scmp.ge.s32.totalorder %s387_s12, 1  ;;  %s387_s12 = sphi %s411_s12, %s15_s12  }
   0x3   : > { %p114_p1 = scmp.lt.s32.totalorder %s387_s12, 3  ;;  %s126_s16 = sshll.u32 %s439_s0, 4  ;;  %s127_s16 = int_to_ptr.vmem [resolvable:$true] %s126_s16 }
   0x4   : > { %p329_p3 = scmp.eq.s32.totalorder %s295_s13, 0  ;;  %s136_s19 = sshll.u32 %s440_s1, 4  ;;  %s137_s19 = int_to_ptr.vmem [resolvable:$true] %s136_s19 }
   0x5   : > { %p115_p2 = pnand %p297_p0, %p114_p1  ;;  %s389_s20 = smov [#allocation2]  }
   0x6   : > { %s390_s21 = smov [#allocation4]  }
   0x7   : > { %p322_p4 = pneg %p115_p2 }
   0x8   : > { %156 = sbr.rel (%p115_p2) target bundleno = 38 (0x26), region = 32 }
   0x9   : > { %p323_p5 = pnand %p329_p3, %p322_p4 }
   0xb   : > { %325 = dma.vmem_to_smem (!%p323_p5), %s127_s16, 16, %s389_s20, [#allocation3]  }
   0xc   : > { %328 = dma.vmem_to_smem (!%p323_p5), %s137_s19, 16, %s390_s21, [#allocation5]  }
   0xd   : > { %378 = dma.done.wait (%p329_p3), [#allocation3], 16  }
   0xe   : > { %380 = vsyncadd (%p329_p3), [#allocation3], 4294967280 }
   0xf   : > { %382 = dma.done.wait (%p329_p3), [#allocation5], 16  }
  0x10   : > { %384 = vsyncadd (%p329_p3), [#allocation5], 4294967280 }
  0x11   : > { %168 = sfence }
  0x12   : > { %p185_p6 = scmp.lt.s32.totalorder %s295_s13, 1  ;;  %s194_s22 = sld [smem:[#allocation2]] }
  0x13   : > { %s306_s23 = sld [smem:[#allocation2 + $0x1]] }
  0x14   : > { %s444_s13 = smov (!%p185_p6, %s295_s13), 1  ;;  %s307_s24 = sld [smem:[#allocation4 + $0x5]] }
  0x15   : > { %s304_s25 = sshll.u32 %s444_s13, 3  ;;  %s308_s26 = sld [smem:[#allocation4 + $0x2]] }
  0x16   : > { %s188_s29 = scalar_lea.vmem %s441_s2, %s304_s25  ;;  %s309_s30 = sld [smem:[#allocation4 + $0x4]] }
  0x17   : > { %v193_v0 = vld [vmem:[%s188_s29] sm:$0xff]  ;;  %s310_s4 = sld [smem:[#allocation4 + $0x1]]  ;;  %s192_s9 = scalar_lea.vmem %s442_s3, %s304_s25 }
  0x18   : > { %v195_v1 = vstv %s194_s22  ;;  %s311_s5 = sld [smem:[#allocation4 + $0x3]] }
  0x19   : > { %v198_v2 = vstv %s306_s23  ;;  %v196_v3 = vsub.f32 %v193_v0, %v195_v1  ;;  %s213_s6 = sld [smem:[#allocation4]] }
  0x1a   : > { %vm199_vm0 = vcmp.lt.f32.partialorder %v193_v0, %v198_v2  ;;  %v203_v4 = vstv %s307_s24 }
  0x1b   : > { %v202_v5 = vstv %s308_s26 }
  0x1c   : > { %v204_v6 = vsel %vm199_vm0, %v202_v5, %v203_v4  ;;  %v208_v7 = vstv %s309_s30 }
  0x1d   : > { %v210_v8 = vmul.f32 %v204_v6, %v196_v3  ;;  %v207_v9 = vstv %s310_s4 }
  0x1e   : > { %v209_v10 = vsel %vm199_vm0, %v207_v9, %v208_v7  ;;  %v215_v11 = vstv %s311_s5 }
  0x1f   : > { %v211_v12 = vadd.f32 %v210_v8, %v209_v10  ;;  %v214_v13 = vstv %s213_s6 }
  0x20   : > { %v216_v14 = vsel %vm199_vm0, %v214_v13, %v215_v11 }
  0x21   : > { %v217_v15 = vmul.f32 %v211_v12, %v196_v3 }
  0x23   : > { %v218_v16 = vadd.f32 %v217_v15, %v216_v14 }
  0x25   : > { %219 = vst [vmem:[%s192_s9] sm:$0xff] %v218_v16 }
  0x26 PF: > { %s15_s12 = sadd.s32 1, %s387_s12  }
  0x27   : > { %p12_p7 = scmp.ge.s32.totalorder %s15_s12, 4  }
  0x29   :  { %14 = sbr.rel (!%p12_p7) target bundleno = 2 (0x2), region = 71 }
  0x2e   :  { %239 = vsyncpa [#allocation3], 1 }
  0x2f   :  { %241 = vsyncpa [#allocation3 + $0x1], 1 }
  0x30   :  { %242 = vsyncpa [#allocation5], 1 }

</bundles_post_ra>
